<compile_context>
chip_gen: v6e
topology: v6e:2x2x1
jax: 0.10.0
libtpu: 0.0.40
codegen_flags: <defaults>
</compile_context>

<pallas_src>
import functools

import jax
import jax.numpy as jnp
import numpy as np
from jax import lax
from jax.experimental import pallas as pl
from jax.experimental.pallas import tpu as pltpu

_DELTA = 0.5
_WEIGHT = 1.0
_NUM_FIELDS = 13
_MAX_BLOCK_ROWS = 256          # (13, 256, 128) f32 block = 1.6 MiB per pipeline buffer
_PALLAS_MIN_BOXES = 2048       # below this many (future, box) pairs use the XLA path
_INVALID = -1e8                # wa below this marks an invalid / padded pair


def _rect_geometry(vx, vy):
    """Shared rectangle/circle geometry (in-kernel for GT boxes, wrapper for the ego box).

    vx/vy are lists of the 4 corner coordinates (any broadcastable array shape).
    Returns (width, cx, cy, ox, oy) such that the five circle centers of the original
    get_circle_centers() are (cx, cy) + t * (ox, oy) with t in {0, +-1, +-0.5}.
    Matches the module's math, including the cal_distance quirk
    sqrt(sum(p1 - p2)) ** 2 == |dx + dy|.
    """
    # cal_rectangle_width
    wd = [jnp.abs((vx[i] - vx[(i + 1) % 4]) + (vy[i] - vy[(i + 1) % 4]))
          for i in range(4)]
    width = jnp.minimum(jnp.minimum(wd[0], wd[1]), jnp.minimum(wd[2], wd[3]))

    # cal_rectangle_length: edge i = v[i] - v[i-1]; max & argmax on SQUARED lengths.
    ex = [vx[i] - vx[i - 1] for i in range(4)]
    ey = [vy[i] - vy[i - 1] for i in range(4)]
    e2 = [ex[i] * ex[i] + ey[i] * ey[i] for i in range(4)]
    l2 = jnp.maximum(jnp.maximum(e2[0], e2[1]), jnp.maximum(e2[2], e2[3]))

    # first-index argmax (torch.argmax tie-break); comparisons hoisted and reused.
    # Ties between the two equal-length long edges pick +-the same edge vector; the
    # symmetric t-set makes the final min distance invariant to that choice.
    is0, is1, is2 = e2[0] == l2, e2[1] == l2, e2[2] == l2
    dxs = jnp.where(is0, ex[0], jnp.where(is1, ex[1], jnp.where(is2, ex[2], ex[3])))
    dys = jnp.where(is0, ey[0], jnp.where(is1, ey[1], jnp.where(is2, ey[2], ey[3])))

    # 1/L on the EUP; eps keeps zero-padded (degenerate) boxes finite (their width is
    # also 0, so the offset vector below is exactly 0 and the collision term is 0).
    inv_l = lax.rsqrt(jnp.maximum(l2, 1e-12))

    # offset = (L/2 - width/2) * unit_long_edge.  cos/sin(arctan(dy/dx)) = +-(dx, dy)/L;
    # the sign is dropped because the circle set is symmetric in t.
    scale = 0.5 - 0.5 * width * inv_l
    cx = (vx[0] + vx[1] + vx[2] + vx[3]) * 0.25
    cy = (vy[0] + vy[1] + vy[2] + vy[3]) * 0.25
    return width, cx, cy, scale * dxs, scale * dys


def _ego_geometry(ex, ey, yaw, ego_w, ego_h):
    """to_corners([x, y, w, l, yaw]) + _rect_geometry for the ego box (per future)."""
    cth, sth = jnp.cos(yaw), jnp.sin(yaw)
    hw, hl = ego_w * 0.5, ego_h * 0.5
    base = ((hw, -hl), (hw, hl), (-hw, hl), (-hw, -hl))
    vx = [cth * bx + sth * by + ex for bx, by in base]
    vy = [-sth * bx + cth * by + ey for bx, by in base]
    return _rect_geometry(vx, vy)


def _pair_term(gvx, gvy, ax, ay, oax, oay, wa):
    """Collision term max((wa + wb)/2 - min_{5x5} dist, 0), fully vectorized.

    Ego circles: (ax, ay) + t*(oax, oay); GT circles: B0 + s*Ob with t, s in
    {0, +-1, +-0.5}.  Separable squared distance (P = ego_center - box_center):
        d2(t, s) = |P|^2 + t^2|Oa|^2 + s^2|Ob|^2 + 2t(P.Oa) - 2s(P.Ob) - 2ts(Oa.Ob)
    -> 7 dot products + cheap adds per pair instead of 2 sub + 2 mul + 1 add each.
    """
    wb, bx, by, obx, oby = _rect_geometry(gvx, gvy)

    px, py = ax - bx, ay - by
    pp = px * px + py * py
    aa = oax * oax + oay * oay
    bb = obx * obx + oby * oby
    pa = px * oax + py * oay
    pb = px * obx + py * oby
    ab = oax * obx + oay * oby

    aa4, bb4 = 0.25 * aa, 0.25 * bb
    pa2, pb2 = pa + pa, pb + pb
    u = {1.0: aa + pa2, -1.0: aa - pa2, 0.5: aa4 + pa, -0.5: aa4 - pa}   # t != 0, s == 0
    v = {1.0: bb - pb2, -1.0: bb + pb2, 0.5: bb4 - pb, -0.5: bb4 + pb}   # t == 0, s != 0
    ab_s = {2.0: ab + ab, 1.0: ab, 0.5: 0.5 * ab}

    qs = list(u.values()) + list(v.values())
    for t, ut in u.items():                        # 16 pairs with t != 0 and s != 0
        for s, vs in v.items():
            c = -2.0 * t * s                       # coefficient of (Oa.Ob)
            w = ab_s[abs(c)]
            qs.append(ut + vs + w if c > 0 else ut + vs - w)

    # Balanced pairwise-min tree over the 24 relative terms (keeps VALU slots fed when
    # only one 8-row slab is live).
    while len(qs) > 1:
        nxt = [jnp.minimum(qs[k], qs[k + 1]) for k in range(0, len(qs) - 1, 2)]
        if len(qs) % 2:
            nxt.append(qs[-1])
        qs = nxt

    min_d2 = pp + jnp.minimum(qs[0], 0.0)          # 0.0 == the (center, center) pair
    min_dis = jnp.sqrt(jnp.maximum(min_d2, 0.0))   # guard fp reassociation noise

    term = jnp.maximum((wa + wb) * 0.5 - min_dis, 0.0)
    # Validity is folded into wa (-1e9 for invalid / padded boxes); the select also
    # makes arbitrary (even non-finite) corner data in invalid slots contribute 0.
    return jnp.where(wa > _INVALID, term, 0.0)


def _collision_kernel(data_ref, out_ref):
    """One grid block: (13, rb, 128) field planes -> (8, 128) partial sums."""
    nslab = data_ref.shape[1] // 8

    def slab(i, acc):
        r = pl.multiple_of(i * 8, 8)
        sl = pl.ds(r, 8)
        f = [data_ref[p, sl, :] for p in range(_NUM_FIELDS)]   # 13 x (8, 128) vregs
        term = _pair_term(f[0:8:2], f[1:8:2], f[8], f[9], f[10], f[11], f[12])
        return acc + term

    out_ref[...] = lax.fori_loop(0, nslab, slab, jnp.zeros((8, 128), jnp.float32))


@functools.partial(jax.jit,
                   static_argnames=("delta", "weight", "pallas_min_boxes"))
def collision_loss(sdc_traj_all, sdc_planning_gt, sdc_planning_gt_mask,
                   gt_corners, gt_counts, delta=_DELTA, weight=_WEIGHT,
                   pallas_min_boxes=_PALLAS_MIN_BOXES):
    """gt_corners: [T, Nmax, 4, 2] padded BEV corners (mirrors corners[:, [0,3,4,7], :2]);
       gt_counts:  [T] number of valid boxes per future.  Padded entries may hold any
       finite values (zeros are fine); they contribute exactly zero to the loss."""
    del sdc_planning_gt_mask                 # unused, exactly as in the PyTorch forward
    dtype = sdc_traj_all.dtype
    ego_w, ego_h = 1.85 + delta, 4.084 + delta
    t, nmax = gt_corners.shape[0], gt_corners.shape[1]
    b = t * nmax

    # --- per-future ego geometry (T values), computed ONCE and broadcast ----------
    ego_x = sdc_traj_all[0, :, 0].astype(jnp.float32)
    ego_y = sdc_traj_all[0, :, 1].astype(jnp.float32)
    yaw = sdc_planning_gt[0, :, 2].astype(dtype).astype(jnp.float32)
    wa, acx, acy, aox, aoy = _ego_geometry(ego_x, ego_y, yaw, ego_w, ego_h)   # (T,)

    valid = jnp.arange(nmax)[None, :] < gt_counts[:, None]                    # (T, Nmax)
    wa_masked = jnp.where(valid, wa[:, None], -1e9)                           # (T, Nmax)

    if b < pallas_min_boxes:
        # Tiny workloads: kernel launch + lane padding dominate; run the identical math
        # as one fused XLA expression instead of a pallas_call.
        gvx = [gt_corners[..., i, 0].astype(jnp.float32) for i in range(4)]
        gvy = [gt_corners[..., i, 1].astype(jnp.float32) for i in range(4)]
        term = _pair_term(gvx, gvy, acx[:, None], acy[:, None],
                          aox[:, None], aoy[:, None], wa_masked)
        return (jnp.sum(term) * weight).reshape(1).astype(dtype)

    # --- dense (sublane, lane) padding / block geometry ----------------------------
    rows = -(-b // 128)                       # 128-lane rows needed
    rows8 = max(8, -(-rows // 8) * 8)         # pad to a multiple of 8 sublanes
    # Even block count so both v7x TensorCores get work under "parallel" semantics;
    # <= 256-row blocks (3.3 MiB double-buffered) fit every default scoped-VMEM limit.
    g = max(2, 2 * (-(-rows8 // (2 * _MAX_BLOCK_ROWS))))
    rows_per_block = -(-rows8 // g)
    rb = -(-rows_per_block // 8) * 8
    rp = g * rb
    bp = rp * 128

    gt_flat = gt_corners.reshape(b, 8).T.astype(jnp.float32)                  # (8, B)
    ego_rows = jnp.stack(
        [jnp.broadcast_to(acx[:, None], (t, nmax)),
         jnp.broadcast_to(acy[:, None], (t, nmax)),
         jnp.broadcast_to(aox[:, None], (t, nmax)),
         jnp.broadcast_to(aoy[:, None], (t, nmax)),
         wa_masked], axis=0).reshape(5, b).astype(jnp.float32)                # (5, B)
    fields = jnp.concatenate([gt_flat, ego_rows], axis=0)                     # (13, B)
    if bp != b:
        # Zero padding is exactly neutral: width = 0, offsets = 0, term = 0.
        fields = jnp.pad(fields, ((0, 0), (0, bp - b)))
    data = fields.reshape(_NUM_FIELDS, rp, 128)

    partials = pl.pallas_call(
        _collision_kernel,
        out_shape=jax.ShapeDtypeStruct((g * 8, 128), jnp.float32),
        grid=(g,),
        in_specs=[pl.BlockSpec((_NUM_FIELDS, rb, 128), lambda i: (0, i, 0))],
        out_specs=pl.BlockSpec((8, 128), lambda i: (i, 0)),
        compiler_params=pltpu.CompilerParams(dimension_semantics=("parallel",)),
    )(data)
    return (jnp.sum(partials) * weight).reshape(1).astype(dtype)


def make_gt_corners(centers, sizes):
    # Axis-aligned boxes; corner ordering mirrors LiDARInstance3DBoxes
    # corners[:, [0, 3, 4, 7], :2] == (x0,y0), (x0,y1), (x1,y0), (x1,y1).
    hx = sizes[..., 0] * 0.5
    hy = sizes[..., 1] * 0.5
    x0, x1 = centers[..., 0] - hx, centers[..., 0] + hx
    y0, y1 = centers[..., 1] - hy, centers[..., 1] + hy
    c0 = jnp.stack([x0, y0], -1)
    c1 = jnp.stack([x0, y1], -1)
    c2 = jnp.stack([x1, y0], -1)
    c3 = jnp.stack([x1, y1], -1)
    return jnp.stack([c0, c1, c2, c3], axis=-2)      # [T, Nmax, 4, 2]


def _reference_loss(sdc_traj_all, sdc_planning_gt, gt_corners, gt_counts,
                    delta=_DELTA, weight=_WEIGHT):
    """Pure numpy transliteration of the PyTorch forward (loops and all)."""
    traj = np.asarray(sdc_traj_all, np.float64)
    plan = np.asarray(sdc_planning_gt, np.float64)
    corners_all = np.asarray(gt_corners, np.float64)
    counts = np.asarray(gt_counts)
    w, h = 1.85 + delta, 4.084 + delta

    def cal_distance(p1, p2):
        return np.sqrt(np.sum(p1 - p2) ** 2)

    def cal_width(v):
        return min(cal_distance(v[i], v[(i + 1) % 4]) for i in range(4))

    def cal_length(v):
        e = [np.sqrt(np.sum((v[i] - v[i - 1]) ** 2)) for i in range(4)]
        return int(np.argmax(np.asarray(e))), max(e)

    def length_slope(v):
        idx, _ = cal_length(v)
        return np.arctan((v[idx][1] - v[idx - 1][1]) / (v[idx][0] - v[idx - 1][0]))

    def circle_centers(v):
        wid = cal_width(v)
        _, length = cal_length(v)
        ang = length_slope(v)
        c = v.mean(axis=0)

        def along(dd):
            return np.array([c[0] + dd * np.cos(ang), c[1] + dd * np.sin(ang)])

        d0 = length / 2 - wid / 2
        return np.stack([c, along(d0), along(-d0), along(d0 / 2), along(-d0 / 2)])

    def inter_circles(a, b):
        ac, bc = circle_centers(a), circle_centers(b)
        md = min(np.sqrt(np.sum((ac[i] - bc[j]) ** 2))
                 for i in range(5) for j in range(5))
        return max((cal_width(a) + cal_width(b)) / 2 - md, 0.0)

    def to_corners(x, y, ww, ll, th):
        c = np.array([[ww / 2, -ll / 2], [ww / 2, ll / 2],
                      [-ww / 2, ll / 2], [-ww / 2, -ll / 2]])
        rot = np.array([[np.cos(th), np.sin(th)], [-np.sin(th), np.cos(th)]])
        return (rot @ c.T + np.array([x, y])[:, None]).T

    total = 0.0
    for i in range(corners_all.shape[0]):
        n = int(counts[i])
        if n > 0:
            sdc_box = to_corners(traj[0, i, 0], traj[0, i, 1], w, h, plan[0, i, 2])
            for j in range(n):
                total += inter_circles(sdc_box, corners_all[i, j])
    return total * weight


if __name__ == "__main__":
    key = jax.random.PRNGKey(0)
    kt, ky, kc, ks, kn = jax.random.split(key, 5)

    T, NMAX = 6, 8
    sdc_traj_all = jax.random.normal(kt, (1, T, 2), jnp.float32) * 2.0
    ego_yaw = jax.random.uniform(ky, (1, T, 1), jnp.float32,
                                 minval=-jnp.pi, maxval=jnp.pi)
    sdc_planning_gt = jnp.concatenate([sdc_traj_all + 0.05, ego_yaw], axis=-1)  # (1,T,3)
    sdc_planning_gt_mask = jnp.ones((1, T, 2), jnp.float32)                      # unused

    # TODO(synk): future_gt_bbox is a list of mmdet3d LiDARInstance3DBoxes in the
    # original; here it is represented as a padded BEV-corner array + per-future counts.
    centers = jax.random.uniform(kc, (T, NMAX, 2), jnp.float32, minval=-5.0, maxval=5.0)
    centers = centers.at[0, 0].set(sdc_traj_all[0, 0])     # guarantee one overlap
    sizes = jax.random.uniform(ks, (T, NMAX, 2), jnp.float32, minval=1.5, maxval=4.5)
    gt_counts = jax.random.randint(kn, (T,), 0, NMAX + 1)
    gt_counts = gt_counts.at[0].set(NMAX // 2 + 1)
    gt_corners = make_gt_corners(centers, sizes)

    ref = _reference_loss(sdc_traj_all, sdc_planning_gt, gt_corners, gt_counts)

    # Pallas path (forced with pallas_min_boxes=0) and the small-size XLA fallback
    # path must both match the numpy reference.
    loss_pallas = jax.block_until_ready(collision_loss(
        sdc_traj_all, sdc_planning_gt, sdc_planning_gt_mask,
        gt_corners, gt_counts, pallas_min_boxes=0))
    loss_small = jax.block_until_ready(collision_loss(
        sdc_traj_all, sdc_planning_gt, sdc_planning_gt_mask,
        gt_corners, gt_counts))

    ok = (loss_pallas.shape == (1,)
          and np.allclose(float(loss_pallas[0]), ref, rtol=1e-3, atol=1e-3)
          and np.allclose(float(loss_small[0]), ref, rtol=1e-3, atol=1e-3))
    if ok:
        print("KERNEL_OK")
    else:
        raise SystemExit(
            f"mismatch: pallas={float(loss_pallas[0])} "
            f"xla={float(loss_small[0])} ref={ref}")
</pallas_src>

<mosaic_0001>
module attributes {stable_mosaic.version = 11 : i64} {
  func.func @_collision_kernel(%arg0: i32, %arg1: memref<13x8x128xf32, #tpu.memory_space<vmem>>, %arg2: memref<8x128xf32, #tpu.memory_space<vmem>>) attributes {dimension_semantics = [#tpu.dimension_semantics<parallel>], iteration_bounds = array<i64: 2>, scalar_prefetch = 0 : i64, scratch_operands = 0 : i64, tpu.core_type = #tpu.core_type<tc>, window_params = [{transform_indices = @transform_0, window_bounds = array<i64: 13, 8, 128>}, {transform_indices = @transform_1, window_bounds = array<i64: 8, 128>}]} {
    %cst = arith.constant 0.000000e+00 : f32
    %0 = vector.broadcast %cst : f32 to vector<8x128xf32>
    %c0_i32 = arith.constant 0 : i32
    %c8_i32 = arith.constant 8 : i32
    %1 = arith.muli %c0_i32, %c8_i32 : i32
    %2 = tpu.assume_multiple %1, 8 : i32
    %c0 = arith.constant 0 : index
    %3 = arith.index_cast %2 : i32 to index
    %c0_0 = arith.constant 0 : index
    %4 = vector.load %arg1[%c0, %3, %c0_0] : memref<13x8x128xf32, #tpu.memory_space<vmem>>, vector<1x8x128xf32>
    %5 = vector.shape_cast %4 : vector<1x8x128xf32> to vector<8x128xf32>
    %c1 = arith.constant 1 : index
    %6 = arith.index_cast %2 : i32 to index
    %c0_1 = arith.constant 0 : index
    %7 = vector.load %arg1[%c1, %6, %c0_1] : memref<13x8x128xf32, #tpu.memory_space<vmem>>, vector<1x8x128xf32>
    %8 = vector.shape_cast %7 : vector<1x8x128xf32> to vector<8x128xf32>
    %c2 = arith.constant 2 : index
    %9 = arith.index_cast %2 : i32 to index
    %c0_2 = arith.constant 0 : index
    %10 = vector.load %arg1[%c2, %9, %c0_2] : memref<13x8x128xf32, #tpu.memory_space<vmem>>, vector<1x8x128xf32>
    %11 = vector.shape_cast %10 : vector<1x8x128xf32> to vector<8x128xf32>
    %c3 = arith.constant 3 : index
    %12 = arith.index_cast %2 : i32 to index
    %c0_3 = arith.constant 0 : index
    %13 = vector.load %arg1[%c3, %12, %c0_3] : memref<13x8x128xf32, #tpu.memory_space<vmem>>, vector<1x8x128xf32>
    %14 = vector.shape_cast %13 : vector<1x8x128xf32> to vector<8x128xf32>
    %c4 = arith.constant 4 : index
    %15 = arith.index_cast %2 : i32 to index
    %c0_4 = arith.constant 0 : index
    %16 = vector.load %arg1[%c4, %15, %c0_4] : memref<13x8x128xf32, #tpu.memory_space<vmem>>, vector<1x8x128xf32>
    %17 = vector.shape_cast %16 : vector<1x8x128xf32> to vector<8x128xf32>
    %c5 = arith.constant 5 : index
    %18 = arith.index_cast %2 : i32 to index
    %c0_5 = arith.constant 0 : index
    %19 = vector.load %arg1[%c5, %18, %c0_5] : memref<13x8x128xf32, #tpu.memory_space<vmem>>, vector<1x8x128xf32>
    %20 = vector.shape_cast %19 : vector<1x8x128xf32> to vector<8x128xf32>
    %c6 = arith.constant 6 : index
    %21 = arith.index_cast %2 : i32 to index
    %c0_6 = arith.constant 0 : index
    %22 = vector.load %arg1[%c6, %21, %c0_6] : memref<13x8x128xf32, #tpu.memory_space<vmem>>, vector<1x8x128xf32>
    %23 = vector.shape_cast %22 : vector<1x8x128xf32> to vector<8x128xf32>
    %c7 = arith.constant 7 : index
    %24 = arith.index_cast %2 : i32 to index
    %c0_7 = arith.constant 0 : index
    %25 = vector.load %arg1[%c7, %24, %c0_7] : memref<13x8x128xf32, #tpu.memory_space<vmem>>, vector<1x8x128xf32>
    %26 = vector.shape_cast %25 : vector<1x8x128xf32> to vector<8x128xf32>
    %c8 = arith.constant 8 : index
    %27 = arith.index_cast %2 : i32 to index
    %c0_8 = arith.constant 0 : index
    %28 = vector.load %arg1[%c8, %27, %c0_8] : memref<13x8x128xf32, #tpu.memory_space<vmem>>, vector<1x8x128xf32>
    %29 = vector.shape_cast %28 : vector<1x8x128xf32> to vector<8x128xf32>
    %c9 = arith.constant 9 : index
    %30 = arith.index_cast %2 : i32 to index
    %c0_9 = arith.constant 0 : index
    %31 = vector.load %arg1[%c9, %30, %c0_9] : memref<13x8x128xf32, #tpu.memory_space<vmem>>, vector<1x8x128xf32>
    %32 = vector.shape_cast %31 : vector<1x8x128xf32> to vector<8x128xf32>
    %c10 = arith.constant 10 : index
    %33 = arith.index_cast %2 : i32 to index
    %c0_10 = arith.constant 0 : index
    %34 = vector.load %arg1[%c10, %33, %c0_10] : memref<13x8x128xf32, #tpu.memory_space<vmem>>, vector<1x8x128xf32>
    %35 = vector.shape_cast %34 : vector<1x8x128xf32> to vector<8x128xf32>
    %c11 = arith.constant 11 : index
    %36 = arith.index_cast %2 : i32 to index
    %c0_11 = arith.constant 0 : index
    %37 = vector.load %arg1[%c11, %36, %c0_11] : memref<13x8x128xf32, #tpu.memory_space<vmem>>, vector<1x8x128xf32>
    %38 = vector.shape_cast %37 : vector<1x8x128xf32> to vector<8x128xf32>
    %c12 = arith.constant 12 : index
    %39 = arith.index_cast %2 : i32 to index
    %c0_12 = arith.constant 0 : index
    %40 = vector.load %arg1[%c12, %39, %c0_12] : memref<13x8x128xf32, #tpu.memory_space<vmem>>, vector<1x8x128xf32>
    %41 = vector.shape_cast %40 : vector<1x8x128xf32> to vector<8x128xf32>
    %42 = arith.subf %5, %11 : vector<8x128xf32>
    %43 = arith.subf %8, %14 : vector<8x128xf32>
    %44 = arith.addf %42, %43 : vector<8x128xf32>
    %45 = math.absf %44 : vector<8x128xf32>
    %46 = arith.subf %11, %17 : vector<8x128xf32>
    %47 = arith.subf %14, %20 : vector<8x128xf32>
    %48 = arith.addf %46, %47 : vector<8x128xf32>
    %49 = math.absf %48 : vector<8x128xf32>
    %50 = arith.subf %17, %23 : vector<8x128xf32>
    %51 = arith.subf %20, %26 : vector<8x128xf32>
    %52 = arith.addf %50, %51 : vector<8x128xf32>
    %53 = math.absf %52 : vector<8x128xf32>
    %54 = arith.subf %23, %5 : vector<8x128xf32>
    %55 = arith.subf %26, %8 : vector<8x128xf32>
    %56 = arith.addf %54, %55 : vector<8x128xf32>
    %57 = math.absf %56 : vector<8x128xf32>
    %58 = arith.minimumf %45, %49 : vector<8x128xf32>
    %59 = arith.minimumf %53, %57 : vector<8x128xf32>
    %60 = arith.minimumf %58, %59 : vector<8x128xf32>
    %61 = arith.subf %5, %23 : vector<8x128xf32>
    %62 = arith.subf %11, %5 : vector<8x128xf32>
    %63 = arith.subf %17, %11 : vector<8x128xf32>
    %64 = arith.subf %23, %17 : vector<8x128xf32>
    %65 = arith.subf %8, %26 : vector<8x128xf32>
    %66 = arith.subf %14, %8 : vector<8x128xf32>
    %67 = arith.subf %20, %14 : vector<8x128xf32>
    %68 = arith.subf %26, %20 : vector<8x128xf32>
    %69 = arith.mulf %61, %61 : vector<8x128xf32>
    %70 = arith.mulf %65, %65 : vector<8x128xf32>
    %71 = arith.addf %69, %70 : vector<8x128xf32>
    %72 = arith.mulf %62, %62 : vector<8x128xf32>
    %73 = arith.mulf %66, %66 : vector<8x128xf32>
    %74 = arith.addf %72, %73 : vector<8x128xf32>
    %75 = arith.mulf %63, %63 : vector<8x128xf32>
    %76 = arith.mulf %67, %67 : vector<8x128xf32>
    %77 = arith.addf %75, %76 : vector<8x128xf32>
    %78 = arith.mulf %64, %64 : vector<8x128xf32>
    %79 = arith.mulf %68, %68 : vector<8x128xf32>
    %80 = arith.addf %78, %79 : vector<8x128xf32>
    %81 = arith.maximumf %71, %74 : vector<8x128xf32>
    %82 = arith.maximumf %77, %80 : vector<8x128xf32>
    %83 = arith.maximumf %81, %82 : vector<8x128xf32>
    %84 = arith.cmpf oeq, %71, %83 : vector<8x128xf32>
    %85 = arith.cmpf oeq, %74, %83 : vector<8x128xf32>
    %86 = arith.cmpf oeq, %77, %83 : vector<8x128xf32>
    %87 = arith.select %86, %63, %64 : vector<8x128xi1>, vector<8x128xf32>
    %88 = arith.select %85, %62, %87 : vector<8x128xi1>, vector<8x128xf32>
    %89 = arith.select %84, %61, %88 : vector<8x128xi1>, vector<8x128xf32>
    %90 = arith.select %86, %67, %68 : vector<8x128xi1>, vector<8x128xf32>
    %91 = arith.select %85, %66, %90 : vector<8x128xi1>, vector<8x128xf32>
    %92 = arith.select %84, %65, %91 : vector<8x128xi1>, vector<8x128xf32>
    %cst_13 = arith.constant 9.99999996E-13 : f32
    %93 = vector.broadcast %cst_13 : f32 to vector<8x128xf32>
    %94 = arith.maximumf %83, %93 : vector<8x128xf32>
    %95 = math.rsqrt %94 : vector<8x128xf32>
    %cst_14 = arith.constant 5.000000e-01 : f32
    %96 = vector.broadcast %cst_14 : f32 to vector<8x128xf32>
    %97 = arith.mulf %96, %60 : vector<8x128xf32>
    %98 = arith.mulf %97, %95 : vector<8x128xf32>
    %cst_15 = arith.constant 5.000000e-01 : f32
    %99 = vector.broadcast %cst_15 : f32 to vector<8x128xf32>
    %100 = arith.subf %99, %98 : vector<8x128xf32>
    %101 = arith.addf %5, %11 : vector<8x128xf32>
    %102 = arith.addf %101, %17 : vector<8x128xf32>
    %103 = arith.addf %102, %23 : vector<8x128xf32>
    %cst_16 = arith.constant 2.500000e-01 : f32
    %104 = vector.broadcast %cst_16 : f32 to vector<8x128xf32>
    %105 = arith.mulf %103, %104 : vector<8x128xf32>
    %106 = arith.addf %8, %14 : vector<8x128xf32>
    %107 = arith.addf %106, %20 : vector<8x128xf32>
    %108 = arith.addf %107, %26 : vector<8x128xf32>
    %cst_17 = arith.constant 2.500000e-01 : f32
    %109 = vector.broadcast %cst_17 : f32 to vector<8x128xf32>
    %110 = arith.mulf %108, %109 : vector<8x128xf32>
    %111 = arith.mulf %100, %89 : vector<8x128xf32>
    %112 = arith.mulf %100, %92 : vector<8x128xf32>
    %113 = arith.subf %29, %105 : vector<8x128xf32>
    %114 = arith.subf %32, %110 : vector<8x128xf32>
    %115 = arith.mulf %113, %113 : vector<8x128xf32>
    %116 = arith.mulf %114, %114 : vector<8x128xf32>
    %117 = arith.addf %115, %116 : vector<8x128xf32>
    %118 = arith.mulf %35, %35 : vector<8x128xf32>
    %119 = arith.mulf %38, %38 : vector<8x128xf32>
    %120 = arith.addf %118, %119 : vector<8x128xf32>
    %121 = arith.mulf %111, %111 : vector<8x128xf32>
    %122 = arith.mulf %112, %112 : vector<8x128xf32>
    %123 = arith.addf %121, %122 : vector<8x128xf32>
    %124 = arith.mulf %113, %35 : vector<8x128xf32>
    %125 = arith.mulf %114, %38 : vector<8x128xf32>
    %126 = arith.addf %124, %125 : vector<8x128xf32>
    %127 = arith.mulf %113, %111 : vector<8x128xf32>
    %128 = arith.mulf %114, %112 : vector<8x128xf32>
    %129 = arith.addf %127, %128 : vector<8x128xf32>
    %130 = arith.mulf %35, %111 : vector<8x128xf32>
    %131 = arith.mulf %38, %112 : vector<8x128xf32>
    %132 = arith.addf %130, %131 : vector<8x128xf32>
    %cst_18 = arith.constant 2.500000e-01 : f32
    %133 = vector.broadcast %cst_18 : f32 to vector<8x128xf32>
    %134 = arith.mulf %133, %120 : vector<8x128xf32>
    %cst_19 = arith.constant 2.500000e-01 : f32
    %135 = vector.broadcast %cst_19 : f32 to vector<8x128xf32>
    %136 = arith.mulf %135, %123 : vector<8x128xf32>
    %137 = arith.addf %126, %126 : vector<8x128xf32>
    %138 = arith.addf %129, %129 : vector<8x128xf32>
    %139 = arith.addf %120, %137 : vector<8x128xf32>
    %140 = arith.subf %120, %137 : vector<8x128xf32>
    %141 = arith.addf %134, %126 : vector<8x128xf32>
    %142 = arith.subf %134, %126 : vector<8x128xf32>
    %143 = arith.subf %123, %138 : vector<8x128xf32>
    %144 = arith.addf %123, %138 : vector<8x128xf32>
    %145 = arith.subf %136, %129 : vector<8x128xf32>
    %146 = arith.addf %136, %129 : vector<8x128xf32>
    %147 = arith.addf %132, %132 : vector<8x128xf32>
    %cst_20 = arith.constant 5.000000e-01 : f32
    %148 = vector.broadcast %cst_20 : f32 to vector<8x128xf32>
    %149 = arith.mulf %148, %132 : vector<8x128xf32>
    %150 = arith.addf %139, %143 : vector<8x128xf32>
    %151 = arith.subf %150, %147 : vector<8x128xf32>
    %152 = arith.addf %139, %144 : vector<8x128xf32>
    %153 = arith.addf %152, %147 : vector<8x128xf32>
    %154 = arith.addf %139, %145 : vector<8x128xf32>
    %155 = arith.subf %154, %132 : vector<8x128xf32>
    %156 = arith.addf %139, %146 : vector<8x128xf32>
    %157 = arith.addf %156, %132 : vector<8x128xf32>
    %158 = arith.addf %140, %143 : vector<8x128xf32>
    %159 = arith.addf %158, %147 : vector<8x128xf32>
    %160 = arith.addf %140, %144 : vector<8x128xf32>
    %161 = arith.subf %160, %147 : vector<8x128xf32>
    %162 = arith.addf %140, %145 : vector<8x128xf32>
    %163 = arith.addf %162, %132 : vector<8x128xf32>
    %164 = arith.addf %140, %146 : vector<8x128xf32>
    %165 = arith.subf %164, %132 : vector<8x128xf32>
    %166 = arith.addf %141, %143 : vector<8x128xf32>
    %167 = arith.subf %166, %132 : vector<8x128xf32>
    %168 = arith.addf %141, %144 : vector<8x128xf32>
    %169 = arith.addf %168, %132 : vector<8x128xf32>
    %170 = arith.addf %141, %145 : vector<8x128xf32>
    %171 = arith.subf %170, %149 : vector<8x128xf32>
    %172 = arith.addf %141, %146 : vector<8x128xf32>
    %173 = arith.addf %172, %149 : vector<8x128xf32>
    %174 = arith.addf %142, %143 : vector<8x128xf32>
    %175 = arith.addf %174, %132 : vector<8x128xf32>
    %176 = arith.addf %142, %144 : vector<8x128xf32>
    %177 = arith.subf %176, %132 : vector<8x128xf32>
    %178 = arith.addf %142, %145 : vector<8x128xf32>
    %179 = arith.addf %178, %149 : vector<8x128xf32>
    %180 = arith.addf %142, %146 : vector<8x128xf32>
    %181 = arith.subf %180, %149 : vector<8x128xf32>
    %182 = arith.minimumf %139, %140 : vector<8x128xf32>
    %183 = arith.minimumf %141, %142 : vector<8x128xf32>
    %184 = arith.minimumf %143, %144 : vector<8x128xf32>
    %185 = arith.minimumf %145, %146 : vector<8x128xf32>
    %186 = arith.minimumf %151, %153 : vector<8x128xf32>
    %187 = arith.minimumf %155, %157 : vector<8x128xf32>
    %188 = arith.minimumf %159, %161 : vector<8x128xf32>
    %189 = arith.minimumf %163, %165 : vector<8x128xf32>
    %190 = arith.minimumf %167, %169 : vector<8x128xf32>
    %191 = arith.minimumf %171, %173 : vector<8x128xf32>
    %192 = arith.minimumf %175, %177 : vector<8x128xf32>
    %193 = arith.minimumf %179, %181 : vector<8x128xf32>
    %194 = arith.minimumf %182, %183 : vector<8x128xf32>
    %195 = arith.minimumf %184, %185 : vector<8x128xf32>
    %196 = arith.minimumf %186, %187 : vector<8x128xf32>
    %197 = arith.minimumf %188, %189 : vector<8x128xf32>
    %198 = arith.minimumf %190, %191 : vector<8x128xf32>
    %199 = arith.minimumf %192, %193 : vector<8x128xf32>
    %200 = arith.minimumf %194, %195 : vector<8x128xf32>
    %201 = arith.minimumf %196, %197 : vector<8x128xf32>
    %202 = arith.minimumf %198, %199 : vector<8x128xf32>
    %203 = arith.minimumf %200, %201 : vector<8x128xf32>
    %204 = arith.minimumf %203, %202 : vector<8x128xf32>
    %cst_21 = arith.constant 0.000000e+00 : f32
    %205 = vector.broadcast %cst_21 : f32 to vector<8x128xf32>
    %206 = arith.minimumf %204, %205 : vector<8x128xf32>
    %207 = arith.addf %117, %206 : vector<8x128xf32>
    %cst_22 = arith.constant 0.000000e+00 : f32
    %208 = vector.broadcast %cst_22 : f32 to vector<8x128xf32>
    %209 = arith.maximumf %207, %208 : vector<8x128xf32>
    %210 = math.sqrt %209 : vector<8x128xf32>
    %211 = arith.addf %41, %60 : vector<8x128xf32>
    %cst_23 = arith.constant 5.000000e-01 : f32
    %212 = vector.broadcast %cst_23 : f32 to vector<8x128xf32>
    %213 = arith.mulf %211, %212 : vector<8x128xf32>
    %214 = arith.subf %213, %210 : vector<8x128xf32>
    %cst_24 = arith.constant 0.000000e+00 : f32
    %215 = vector.broadcast %cst_24 : f32 to vector<8x128xf32>
    %216 = arith.maximumf %214, %215 : vector<8x128xf32>
    %cst_25 = arith.constant -1.000000e+08 : f32
    %217 = vector.broadcast %cst_25 : f32 to vector<8x128xf32>
    %218 = arith.cmpf ogt, %41, %217 : vector<8x128xf32>
    %cst_26 = arith.constant 0.000000e+00 : f32
    %219 = vector.broadcast %cst_26 : f32 to vector<8x128xf32>
    %220 = arith.select %218, %216, %219 : vector<8x128xi1>, vector<8x128xf32>
    %221 = arith.addf %0, %220 : vector<8x128xf32>
    %c1_i32 = arith.constant 1 : i32
    %c0_27 = arith.constant 0 : index
    %c0_28 = arith.constant 0 : index
    %222 = vector.load %arg2[%c0_27, %c0_28] : memref<8x128xf32, #tpu.memory_space<vmem>>, vector<8x128xf32>
    tpu.vector_store %arg2[%c0_27, %c0_28], %221 {strides = array<i32>} : memref<8x128xf32, #tpu.memory_space<vmem>>, vector<8x128xf32>,
    return
  }
  func.func @transform_0(%arg0: i32) -> (i32, i32, i32) {
    %c0_i32 = arith.constant 0 : i32
    %c0_i32_0 = arith.constant 0 : i32
    %c0_i32_1 = arith.constant 0 : i32
    return %c0_i32, %arg0, %c0_i32_0 : i32, i32, i32
  }
  func.func @transform_1(%arg0: i32) -> (i32, i32) {
    %c0_i32 = arith.constant 0 : i32
    %c0_i32_0 = arith.constant 0 : i32
    return %arg0, %c0_i32 : i32, i32
  }
}

</mosaic_0001>

<bundles_post_ra>
// kernel: collision_loss.1
= control target key start
LH: loop header
LB: loop body
LE: loop exit
PB: predicated region body
PF: predicated region fallthrough
CT: control target
= control target key end

     0   :  { %s564_s6 = smov 0   ;;  %s566_s7 = smov 0   ;;  %s669_s0 = inlined_call_operand.vmem [shape: f32[13,16,128], index: 0, kind: input, shape index: {}]   ;;  %s670_s1 = inlined_call_operand.vmem [shape: f32[16,128], index: 1, kind: output, shape index: {}]  }
   0x1   :  { %s568_s8 = smov 0  }
   0x2 LB: > { %s479_s9 = sadd.s32 4294967295, %s552_s8   ;;  %s581_s10 = sadd.s32 1, %s552_s8   ;;  %s552_s8 = sphi %s568_s8, %s673_s8   ;;  %s548_s7 = sphi %s566_s7, %s672_s7   ;;  %s544_s6 = sphi %s564_s6, %s671_s6  }
   0x3   : > { %s15_s11 = ssub.s32 %s552_s8, %s581_s10  ;;  %s18_s12 = sadd.s32 1, %s548_s7 }
   0x4   : > { %p16_p0 = scmp.eq.s32.totalorder %s15_s11, 0  ;;  %p25_p1 = scmp.ne.s32.totalorder %s548_s7, %s544_s6 }
   0x5   : > { %p26_p2 = scmp.eq.s32.totalorder %s552_s8, 0  ;;  %p482_p4 = scmp.ge.s32.totalorder %s552_s8, 2 }
   0x6   : > { %s590_s13 = scalar_select %p16_p0, %s548_s7, %s18_s12  }
   0x7   : > { %p27_p3 = por %p26_p2, %p25_p1  ;;  %77 = sbr.rel (%p482_p4) target bundleno = 23 (0x17), region = 16 }
   0xc   : > { %80 = sbr.rel (!%p27_p3) target bundleno = 23 (0x17), region = 20  ;;  %s82_s14 = sand.u32 (%p27_p3), 1, %s548_s7  }
   0xd   : > { %s483_s15 = sshll.u32 (%p27_p3), %s552_s8, 3  ;;  %s500_s16 = smul.u32 (%p27_p3), 104, %s82_s14 }
   0xe   : > { %s86_s19 = scalar_lea.vmem (%p27_p3), %s669_s0, %s483_s15 }
   0xf   : > { %v139_v0 = vld [vmem:[%s86_s19] sm:$0xff] (%p27_p3)  ;;  %v141_v1 = vld [vmem:[%s86_s19 + $0x10] sm:$0xff] (%p27_p3)  ;;  %s84_s20 = scalar_lea.vmem (%p27_p3), [#allocation2], %s500_s16 }
  0x10   : > { %v143_v2 = vld [vmem:[%s86_s19 + $0x20] sm:$0xff] (%p27_p3)  ;;  %v145_v3 = vld [vmem:[%s86_s19 + $0x30] sm:$0xff] (%p27_p3)  ;;  %140 = vst [vmem:[%s84_s20] sm:$0xff] (%p27_p3), %v139_v0  ;;  %142 = vst [vmem:[%s84_s20 + $0x8] sm:$0xff] (%p27_p3), %v141_v1 }
  0x11   : > { %v147_v4 = vld [vmem:[%s86_s19 + $0x40] sm:$0xff]  ;;  %v149_v5 = vld [vmem:[%s86_s19 + $0x50] sm:$0xff]  ;;  %144 = vst [vmem:[%s84_s20 + $0x10] sm:$0xff] %v143_v2  ;;  %146 = vst [vmem:[%s84_s20 + $0x18] sm:$0xff] %v145_v3 }
  0x12   : > { %148 = vst [vmem:[%s84_s20 + $0x20] sm:$0xff] %v147_v4  ;;  %150 = vst [vmem:[%s84_s20 + $0x28] sm:$0xff] %v149_v5  ;;  %v151_v6 = vld [vmem:[%s86_s19 + $0x60] sm:$0xff]  ;;  %v153_v7 = vld [vmem:[%s86_s19 + $0x70] sm:$0xff] }
  0x13   : > { %v155_v8 = vld [vmem:[%s86_s19 + $0x80] sm:$0xff]  ;;  %152 = vst [vmem:[%s84_s20 + $0x30] sm:$0xff] %v151_v6  ;;  %154 = vst [vmem:[%s84_s20 + $0x38] sm:$0xff] %v153_v7  ;;  %v157_v9 = vld [vmem:[%s86_s19 + $0x90] sm:$0xff] }
  0x14   : > { %156 = vst [vmem:[%s84_s20 + $0x40] sm:$0xff] %v155_v8  ;;  %v159_v10 = vld [vmem:[%s86_s19 + $0xa0] sm:$0xff]  ;;  %v161_v11 = vld [vmem:[%s86_s19 + $0xb0] sm:$0xff]  ;;  %158 = vst [vmem:[%s84_s20 + $0x48] sm:$0xff] %v157_v9 }
  0x15   : > { %160 = vst [vmem:[%s84_s20 + $0x50] sm:$0xff] %v159_v10  ;;  %162 = vst [vmem:[%s84_s20 + $0x58] sm:$0xff] %v161_v11  ;;  %v163_v12 = vld [vmem:[%s86_s19 + $0xc0] sm:$0xff] }
  0x16   : > { %164 = vst [vmem:[%s84_s20 + $0x60] sm:$0xff] %v163_v12 }
  0x17 PF: > { %p484_p5 = scmp.ge.s32.totalorder %s552_s8, 1  ;;  %p169_p6 = scmp.lt.s32.totalorder %s552_s8, 3 }
  0x19   : > { %p170_p7 = pnand %p484_p5, %p169_p6 }
  0x1a   : > { %s176_s21 = sand.u32 (!%p170_p7), 1, %s544_s6   ;;  %p194_p8 = scmp.lt.s32.totalorder (!%p170_p7), %s479_s9, 1 }
  0x1b   : > { %173 = sbr.rel (%p170_p7) target bundleno = 126 (0x7e), region = 58 }
  0x1c   : > { %s501_s22 = smul.u32 (!%p170_p7), 104, %s176_s21 }
  0x1e   : > { %s601_s23 = scalar_lea.vmem (!%p170_p7), [#allocation2], %s501_s22 }
  0x20   : > { %v198_v13 = vld [vmem:[%s601_s23] sm:$0xff]  ;;  %v486_v14 = vld [vmem:[%s601_s23 + $0x8] sm:$0xff]  ;;  %v487_v15 = vld [vmem:[%s601_s23 + $0x10] sm:$0xff]  ;;  %s675_s9 = smov (!%p194_p8, %s479_s9), 1 }
  0x21   : > { %v489_v16 = vld [vmem:[%s601_s23 + $0x20] sm:$0xff]  ;;  %v488_v17 = vld [vmem:[%s601_s23 + $0x18] sm:$0xff]  ;;  %v491_v18 = vld [vmem:[%s601_s23 + $0x30] sm:$0xff]  ;;  %v235_v21 = vsub.f32 %v198_v13, %v487_v15  ;;  %v613_v23 = vsub.f32 %v487_v15, %v198_v13  ;;  %v291_v28 = vadd.f32 %v487_v15, %v198_v13  ;;  %s485_s24 = sshll.u32 %s675_s9, 3 }
  0x22   : > { %v492_v19 = vld [vmem:[%s601_s23 + $0x38] sm:$0xff]  ;;  %v490_v20 = vld [vmem:[%s601_s23 + $0x28] sm:$0xff]  ;;  %v611_v22 = vsub.f32 %v198_v13, %v491_v18  ;;  %v256_v24 = vsub.f32 %v489_v16, %v487_v15  ;;  %v257_v25 = vsub.f32 %v491_v18, %v489_v16  ;;  %v617_v27 = vsub.f32 %v488_v17, %v486_v14  ;;  %v493_v5 = vld [vmem:[%s601_s23 + $0x40] sm:$0xff]  ;;  %s197_s27 = scalar_lea.vmem %s670_s1, %s485_s24 }
  0x23   : > { %v615_v26 = vsub.f32 %v486_v14, %v492_v19  ;;  %v236_v29 = vsub.f32 %v486_v14, %v488_v17  ;;  %v239_v30 = vsub.f32 %v487_v15, %v489_v16  ;;  %v260_v31 = vsub.f32 %v490_v20, %v488_v17  ;;  %v494_v6 = vld [vmem:[%s601_s23 + $0x48] sm:$0xff]  ;;  %v495_v11 = vld [vmem:[%s601_s23 + $0x50] sm:$0xff]  ;;  %v496_v12 = vld [vmem:[%s601_s23 + $0x58] sm:$0xff] }
  0x24   : > { %v261_v32 = vsub.f32 %v492_v19, %v490_v20  ;;  %v240_v33 = vsub.f32 %v488_v17, %v490_v20  ;;  %v243_v34 = vsub.f32 %v489_v16, %v491_v18  ;;  %v262_v35 = vmul.f32 %v611_v22, %v611_v22 }
  0x25   : > { %v263_v36 = vmul.f32 %v615_v26, %v615_v26  ;;  %v244_v37 = vsub.f32 %v490_v20, %v492_v19  ;;  %v265_v38 = vmul.f32 %v613_v23, %v613_v23  ;;  %v266_v39 = vmul.f32 %v617_v27, %v617_v27 }
  0x26   : > { %v268_v40 = vmul.f32 %v256_v24, %v256_v24  ;;  %v247_v41 = vsub.f32 %v491_v18, %v198_v13  ;;  %v269_v43 = vmul.f32 %v260_v31, %v260_v31  ;;  %v271_v44 = vmul.f32 %v257_v25, %v257_v25 }
  0x27   : > { %v264_v42 = vadd.f32 %v263_v36, %v262_v35  ;;  %v248_v45 = vsub.f32 %v492_v19, %v486_v14  ;;  %v267_v46 = vadd.f32 %v266_v39, %v265_v38  ;;  %v272_v47 = vmul.f32 %v261_v32, %v261_v32 }
  0x28   : > { %v295_v48 = vadd.f32 %v488_v17, %v486_v14  ;;  %v270_v49 = vadd.f32 %v269_v43, %v268_v40  ;;  %v237_v52 = vadd.f32 %v236_v29, %v235_v21  ;;  %v241_v53 = vadd.f32 %v240_v33, %v239_v30 }
  0x29   : > { %v273_v50 = vadd.f32 %v272_v47, %v271_v44  ;;  %v274_v51 = vmax.f32 %v264_v42, %v267_v46  ;;  %v292_v54 = vadd.f32 %v489_v16, %v291_v28  ;;  %v245_v56 = vadd.f32 %v244_v37, %v243_v34 }
  0x2a   : > { %v296_v55 = vadd.f32 %v490_v20, %v295_v48  ;;  %v249_v57 = vadd.f32 %v248_v45, %v247_v41  ;;  %v238_v60 = vand.u32 2147483647, %v237_v52  ;;  %v242_v61 = vand.u32 2147483647, %v241_v53 }
  0x2b   : > { %v275_v58 = vmax.f32 %v270_v49, %v273_v50  ;;  %v293_v62 = vadd.f32 %v491_v18, %v292_v54  ;;  %v246_v0 = vand.u32 2147483647, %v245_v56  ;;  %v306_v14 = vmul.f32 %v495_v11, %v495_v11 }
  0x2c   : > { %v297_v63 = vadd.f32 %v492_v19, %v296_v55  ;;  %v250_v1 = vand.u32 2147483647, %v249_v57  ;;  %v251_v7 = vmin.f32 %v238_v60, %v242_v61  ;;  %v307_v15 = vmul.f32 %v496_v12, %v496_v12 }
  0x2d   : > { %v276_v59 = vmax.f32 %v274_v51, %v275_v58  ;;  %v294_v3 = vmul.f32 0.25, %v293_v62 }
  0x2e   : > { %v298_v4 = vmul.f32 0.25, %v297_v63  ;;  %v252_v8 = vmin.f32 %v246_v0, %v250_v1  ;;  %v308_v21 = vadd.f32 %v307_v15, %v306_v14 }
  0x2f   : > { %v286_v2 = vmax.f32 %v276_v59, 1e-12  ;;  %v629_v9 = vsub.f32 %v493_v5, %v294_v3  ;;  %vm279_vm0 = vcmp.eq.f32.partialorder %v270_v49, %v276_v59  ;;  %vm278_vm1 = vcmp.eq.f32.partialorder %v267_v46, %v276_v59 }
  0x30   : > { %v631_v10 = vsub.f32 %v494_v6, %v298_v4  ;;  %v635_v13 = vmin.f32 %v251_v7, %v252_v8  ;;  %v280_v16 = vsel %vm279_vm0, %v256_v24, %v257_v25  ;;  %v283_v17 = vsel %vm279_vm0, %v260_v31, %v261_v32 }
  0x31   : > { %526 = vrsqrt.f32 %v286_v2  ;;  %v312_v18 = vmul.f32 %v495_v11, %v629_v9  ;;  %vm277_vm2 = vcmp.eq.f32.partialorder %v264_v42, %v276_v59  ;;  %v281_v28 = vsel %vm278_vm1, %v613_v23, %v280_v16 }
  0x32   : > { %v313_v19 = vmul.f32 %v496_v12, %v631_v10  ;;  %v288_v20 = vmul.f32 0.5, %v635_v13  ;;  %v284_v29 = vsel %vm278_vm1, %v617_v27, %v283_v17  ;;  %v282_v35 = vsel %vm277_vm2, %v611_v22, %v281_v28 }
  0x33   : > { %v285_v24 = vsel %vm277_vm2, %v615_v26, %v284_v29  ;;  %v321_v25 = vmul.f32 0.25, %v308_v21 }
  0x34   : > { %v314_v33 = vadd.f32 %v313_v19, %v312_v18 }
  0x36   : > { %v323_v32 = vadd.f32 %v314_v33, %v314_v33  ;;  %v327_v38 = vadd.f32 %v321_v25, %v314_v33  ;;  %v328_v39 = vsub.f32 %v321_v25, %v314_v33 }
  0x38   : > { %v325_v44 = vadd.f32 %v323_v32, %v308_v21  ;;  %v326_v45 = vsub.f32 %v308_v21, %v323_v32  ;;  %v368_v48 = vmin.f32 %v327_v38, %v328_v39 }
  0x3a   : > { %v367_v47 = vmin.f32 %v325_v44, %v326_v45 }
  0x3c   : > { %v379_v57 = vmin.f32 %v367_v47, %v368_v48 }
  0x3e   : > { %v527_v30 = vpop.eup %526 }
  0x3f   : > { %v289_v34 = vmul.f32 %v527_v30, %v288_v20 }
  0x41   : > { %v290_v31 = vsub.f32 0.5, %v289_v34 }
  0x43   : > { %v299_v36 = vmul.f32 %v290_v31, %v282_v35  ;;  %v300_v37 = vmul.f32 %v290_v31, %v285_v24 }
  0x45   : > { %v309_v40 = vmul.f32 %v299_v36, %v299_v36  ;;  %v310_v41 = vmul.f32 %v300_v37, %v300_v37  ;;  %v315_v23 = vmul.f32 %v629_v9, %v299_v36  ;;  %v316_v27 = vmul.f32 %v631_v10, %v300_v37 }
  0x46   : > { %v318_v42 = vmul.f32 %v495_v11, %v299_v36  ;;  %v319_v43 = vmul.f32 %v496_v12, %v300_v37 }
  0x47   : > { %v311_v22 = vadd.f32 %v310_v41, %v309_v40  ;;  %v317_v46 = vadd.f32 %v316_v27, %v315_v23 }
  0x48   : > { %v320_v26 = vadd.f32 %v319_v43, %v318_v42 }
  0x49   : > { %v322_v49 = vmul.f32 0.25, %v311_v22  ;;  %v324_v50 = vadd.f32 %v317_v46, %v317_v46 }
  0x4a   : > { %v333_v51 = vadd.f32 %v320_v26, %v320_v26  ;;  %v334_v56 = vmul.f32 0.5, %v320_v26 }
  0x4b   : > { %v329_v52 = vsub.f32 %v311_v22, %v324_v50  ;;  %v330_v53 = vadd.f32 %v324_v50, %v311_v22  ;;  %v331_v54 = vsub.f32 %v322_v49, %v317_v46  ;;  %v332_v55 = vadd.f32 %v322_v49, %v317_v46 }
  0x4c   : > { %v303_v46 = vmul.f32 %v629_v9, %v629_v9 }
  0x4d   : > { %v335_v58 = vadd.f32 %v329_v52, %v325_v44  ;;  %v337_v59 = vadd.f32 %v330_v53, %v325_v44  ;;  %v339_v60 = vadd.f32 %v331_v54, %v325_v44  ;;  %v341_v61 = vadd.f32 %v332_v55, %v325_v44 }
  0x4e   : > { %v343_v62 = vadd.f32 %v329_v52, %v326_v45  ;;  %v345_v63 = vadd.f32 %v330_v53, %v326_v45  ;;  %v347_v0 = vadd.f32 %v331_v54, %v326_v45  ;;  %v349_v1 = vadd.f32 %v332_v55, %v326_v45 }
  0x4f   : > { %v336_v2 = vsub.f32 %v335_v58, %v333_v51  ;;  %v338_v3 = vadd.f32 %v337_v59, %v333_v51  ;;  %v340_v4 = vsub.f32 %v339_v60, %v320_v26  ;;  %v342_v5 = vadd.f32 %v341_v61, %v320_v26 }
  0x50   : > { %v344_v6 = vadd.f32 %v343_v62, %v333_v51  ;;  %v346_v7 = vsub.f32 %v345_v63, %v333_v51  ;;  %v348_v8 = vadd.f32 %v347_v0, %v320_v26  ;;  %v350_v11 = vsub.f32 %v349_v1, %v320_v26 }
  0x51   : > { %v351_v12 = vadd.f32 %v329_v52, %v327_v38  ;;  %v353_v14 = vadd.f32 %v330_v53, %v327_v38  ;;  %v355_v15 = vadd.f32 %v331_v54, %v327_v38  ;;  %v357_v16 = vadd.f32 %v332_v55, %v327_v38 }
  0x52   : > { %v359_v17 = vadd.f32 %v329_v52, %v328_v39  ;;  %v361_v18 = vadd.f32 %v330_v53, %v328_v39  ;;  %v363_v19 = vadd.f32 %v331_v54, %v328_v39  ;;  %v365_v20 = vadd.f32 %v332_v55, %v328_v39 }
  0x53   : > { %v352_v21 = vsub.f32 %v351_v12, %v320_v26  ;;  %v354_v28 = vadd.f32 %v353_v14, %v320_v26  ;;  %v356_v29 = vsub.f32 %v355_v15, %v334_v56  ;;  %v358_v30 = vadd.f32 %v357_v16, %v334_v56 }
  0x54   : > { %v360_v33 = vadd.f32 %v359_v17, %v320_v26  ;;  %v362_v34 = vsub.f32 %v361_v18, %v320_v26  ;;  %v364_v35 = vadd.f32 %v363_v19, %v334_v56  ;;  %v366_v24 = vsub.f32 %v365_v20, %v334_v56 }
  0x55   : > { %v369_v25 = vmin.f32 %v329_v52, %v330_v53  ;;  %v370_v31 = vmin.f32 %v331_v54, %v332_v55  ;;  %v371_v32 = vmin.f32 %v336_v2, %v338_v3  ;;  %v372_v36 = vmin.f32 %v340_v4, %v342_v5  ;;  %v497_v55 = vld [vmem:[%s601_s23 + $0x60] sm:$0xff] }
  0x56   : > { %v373_v37 = vmin.f32 %v344_v6, %v346_v7  ;;  %v374_v40 = vmin.f32 %v348_v8, %v350_v11  ;;  %v375_v41 = vmin.f32 %v352_v21, %v354_v28  ;;  %v376_v38 = vmin.f32 %v356_v29, %v358_v30 }
  0x57   : > { %v377_v23 = vmin.f32 %v360_v33, %v362_v34  ;;  %v378_v27 = vmin.f32 %v364_v35, %v366_v24  ;;  %v380_v42 = vmin.f32 %v369_v25, %v370_v31  ;;  %v381_v39 = vmin.f32 %v371_v32, %v372_v36 }
  0x58   : > { %v382_v43 = vmin.f32 %v373_v37, %v374_v40  ;;  %v383_v44 = vmin.f32 %v375_v41, %v376_v38  ;;  %v304_v26 = vmul.f32 %v631_v10, %v631_v10  ;;  %v400_v56 = vadd.f32 %v497_v55, %v635_v13 }
  0x59   : > { %v384_v45 = vmin.f32 %v377_v23, %v378_v27  ;;  %v385_v22 = vmin.f32 %v379_v57, %v380_v42  ;;  %vm404_vm5 = vcmp.gt.f32.partialorder %v497_v55, -1e+08 }
  0x5a   : > { %v386_v47 = vmin.f32 %v381_v39, %v382_v43  ;;  %v305_v50 = vadd.f32 %v304_v26, %v303_v46  ;;  %v401_v58 = vmul.f32 0.5, %v400_v56 }
  0x5b   : > { %v387_v48 = vmin.f32 %v383_v44, %v384_v45 }
  0x5c   : > { %v388_v49 = vmin.f32 %v385_v22, %v386_v47 }
  0x5e   : > { %v389_v51 = vmin.f32 %v388_v49, %v387_v48 }
  0x60   : > { %v390_v52 = vmin.f32 %v389_v51, 0.0 }
  0x62   : > { %v391_v53 = vadd.f32 %v390_v52, %v305_v50 }
  0x64   : > { %v392_v54 = vmax.f32 %v391_v53, 0.0 }
  0x66   : > { %528 = vrsqrt.f32 %v392_v54  ;;  %vm395_vm3 = vcmp.eq.f32.partialorder %v392_v54, inf  ;;  %v398_v9 = vand.u32 2147483648, %v392_v54  ;;  %vm397_vm4 = vcmp.eq.f32.partialorder %v392_v54, 0.0 }
  0x73   : > { %v529_v57 = vpop.eup %528 }
  0x74   : > { %v394_v10 = vmul.f32 %v529_v57, %v392_v54 }
  0x76   : > { %v396_v59 = vsel %vm395_vm3, %v392_v54, %v394_v10 }
  0x77   : > { %v399_v60 = vsel %vm397_vm4, %v398_v9, %v396_v59 }
  0x78   : > { %v402_v61 = vsub.f32 %v401_v58, %v399_v60 }
  0x7a   : > { %v403_v62 = vmax.f32 %v402_v61, 0.0 }
  0x7c   : > { %v405_v63 = vsel %vm404_vm5, %v403_v62, 0.0 }
  0x7d   : > { %407 = vst [vmem:[%s197_s27] sm:$0xff] %v405_v63 }
  0x7e PF: > { %p8_p9 = scmp.ge.s32.totalorder %s581_s10, 4   ;;  %s671_s6 = smov %s548_s7 }
  0x7f   : > { %s672_s7 = smov %s590_s13  ;;  %s673_s8 = smov %s581_s10 }
  0x80   :  { %10 = sbr.rel (!%p8_p9) target bundleno = 2 (0x2), region = 109 }

</bundles_post_ra>
